<compile_context>
chip_gen: v7x
topology: tpu7x:2x2x1
jax: 0.10.0
libtpu: 0.0.40
codegen_flags: <defaults>
</compile_context>

<pallas_src>
import jax
import jax.numpy as jnp
from jax.experimental import pallas as pl
from jax.experimental.pallas import tpu as pltpu  # noqa: F401  (TPU backend)


def _identity_copy_kernel(x_ref, o_ref):
    # Full-array block: one vectorized VMEM->VMEM copy. This is the entire
    # "computation" of the module (reshape = relabeled contiguous data).
    o_ref[...] = x_ref[...]


@jax.jit
def redundant_reshape_pattern4(x):
    """x: (4, 6, 8) float32 -> (4, 4, 12) float32 (row-major reshape)."""
    # Metadata-only row-major flatten to a lane-dense (1, 192) slab.
    flat = x.reshape(1, 192)

    out_flat = pl.pallas_call(
        _identity_copy_kernel,
        out_shape=jax.ShapeDtypeStruct(flat.shape, flat.dtype),
        grid=(1,),
        in_specs=[pl.BlockSpec(flat.shape, lambda i: (0, 0))],
        out_specs=pl.BlockSpec(flat.shape, lambda i: (0, 0)),
        # Output aliases input: no separate output HBM allocation for the copy.
        input_output_aliases={0: 0},
    )(flat)

    # Metadata-only row-major reshape to the module's output shape.
    return out_flat.reshape(4, 4, 12)


if __name__ == "__main__":
    key = jax.random.PRNGKey(0)
    x = jax.random.normal(key, (4, 6, 8), dtype=jnp.float32)

    out = redundant_reshape_pattern4(x)
    jax.block_until_ready(out)

    # Reference: the two PyTorch reshapes compose to one row-major reshape.
    ref = jnp.reshape(jnp.reshape(x, (4, 12, 4)), (4, 4, 12))
    assert out.shape == (4, 4, 12), out.shape
    assert out.dtype == jnp.float32, out.dtype
    assert jnp.array_equal(out, ref), "mismatch vs reference reshape"

    print("KERNEL_OK")
</pallas_src>

<mosaic_0001>
module attributes {stable_mosaic.version = 11 : i64} {
  func.func @_identity_copy_kernel(%arg0: i32, %arg1: memref<1x192xf32, #tpu.memory_space<vmem>>, %arg2: memref<1x192xf32, #tpu.memory_space<vmem>>) attributes {dimension_semantics = [#tpu.dimension_semantics<arbitrary>], iteration_bounds = array<i64: 1>, scalar_prefetch = 0 : i64, scratch_operands = 0 : i64, tpu.core_type = #tpu.core_type<tc>, window_params = [{pipeline_mode = #tpu.pipeline_mode<synchronous>, transform_indices = @transform_0, window_bounds = array<i64: 1, 192>}, {pipeline_mode = #tpu.pipeline_mode<synchronous>, transform_indices = @transform_1, window_bounds = array<i64: 1, 192>}]} {
    %c0 = arith.constant 0 : index
    %c0_0 = arith.constant 0 : index
    %0 = vector.load %arg1[%c0, %c0_0] : memref<1x192xf32, #tpu.memory_space<vmem>>, vector<1x192xf32>
    %c0_1 = arith.constant 0 : index
    %c0_2 = arith.constant 0 : index
    %1 = vector.load %arg2[%c0_1, %c0_2] : memref<1x192xf32, #tpu.memory_space<vmem>>, vector<1x192xf32>
    tpu.vector_store %arg2[%c0_1, %c0_2], %0 {strides = array<i32>} : memref<1x192xf32, #tpu.memory_space<vmem>>, vector<1x192xf32>,
    return
  }
  func.func @transform_0(%arg0: i32) -> (i32, i32) {
    %c0_i32 = arith.constant 0 : i32
    %c0_i32_0 = arith.constant 0 : i32
    %c0_i32_1 = arith.constant 0 : i32
    return %c0_i32, %c0_i32_0 : i32, i32
  }
  func.func @transform_1(%arg0: i32) -> (i32, i32) {
    %c0_i32 = arith.constant 0 : i32
    %c0_i32_0 = arith.constant 0 : i32
    %c0_i32_1 = arith.constant 0 : i32
    return %c0_i32, %c0_i32_0 : i32, i32
  }
}

</mosaic_0001>

<bundles_post_ra>
// kernel: redundant_reshape_pattern4.1
= control target key start
LH: loop header
LB: loop body
LE: loop exit
PB: predicated region body
PF: predicated region fallthrough
CT: control target
= control target key end

     0   :  { %v9_v0 = vlaneseq  ;;  %s34_s0 = inlined_call_operand.vmem [shape: f32[1,192], index: 0, kind: input, shape index: {}, may-alias: {0,1}]   ;;  %s35_s1 = inlined_call_operand.vmem [shape: f32[1,192], index: 1, kind: output, shape index: {}, may-alias: {0,1}]  }
   0x1   :  { %v8_v1 = vld [vmem:[%s34_s0] sm:$0x3] }
   0x2   :  { %vm11_vm0 = vcmp.lt.s32.totalorder %v9_v0, 192 }
   0x3   :  { %13 = vst.msk [vmem:[%s35_s1] sm:$0x3] %vm11_vm0, %v8_v1 }

</bundles_post_ra>
